<compile_context>
chip_gen: v7x
topology: tpu7x:2x2x1
jax: 0.10.0
libtpu: 0.0.40
codegen_flags: <defaults>
</compile_context>

<pallas_src>
import functools

import jax
import jax.numpy as jnp
from jax.experimental import pallas as pl
from jax.experimental.pallas import tpu as pltpu


_COL_CANDIDATES = (512, 384, 256, 128)   # lane-dense widths (multiples of 128)
_TARGET_BLOCK_BYTES = 2 * 1024 * 1024    # ~2 MiB per double-buffered stream


def _round_up(n: int, m: int) -> int:
    return ((n + m - 1) // m) * m


def _sublane_multiple(dtype) -> int:
    # f32 -> 8, bf16 -> 16, int8/fp8 -> 32 (keeps blocks on native packed tiling).
    return max(8, 32 // max(jnp.dtype(dtype).itemsize, 1))


def _choose_layout(total: int):
    """Pick (rows, cols, needs_pad) with cols % 128 == 0, preferring a cols
    that divides `total` exactly so no pad / slice HBM passes are needed."""
    for cols in _COL_CANDIDATES:
        if total % cols == 0:
            return total // cols, cols, False
    # TODO(synk): odd element counts still pay one pad + slice pass; every
    # NCHW shape whose element count is a multiple of 128 hits the free path.
    cols = 128
    rows = -(-total // cols)
    return rows, cols, True


def _relu_kernel(x_ref, o_ref, *, cutoff):
    x = x_ref[...]
    o_ref[...] = jnp.maximum(x, jnp.asarray(cutoff, dtype=x.dtype))


def _relu_noise_hwrng_kernel(seed_ref, x_ref, o_ref, *, cutoff, out_noise):
    # Per-block seed -> output is invariant to the tile-size / grid choice.
    pltpu.prng_seed(seed_ref[0], pl.program_id(0))
    z = pltpu.stateful_normal(x_ref.shape, jnp.float32)
    x = x_ref[...].astype(jnp.float32)
    out = jnp.maximum(x, jnp.float32(cutoff)) + jnp.float32(out_noise) * z
    o_ref[...] = out.astype(o_ref.dtype)


def _relu_noise_zin_kernel(x_ref, z_ref, o_ref, *, cutoff, out_noise):
    x = x_ref[...].astype(jnp.float32)
    z = z_ref[...].astype(jnp.float32)
    out = jnp.maximum(x, jnp.float32(cutoff)) + jnp.float32(out_noise) * z
    o_ref[...] = out.astype(o_ref.dtype)


def relu_forward(x: jax.Array, cutoff: float = 0.0,
                 out_noise=None, key=None) -> jax.Array:
    """Pallas equivalent of ReLU(cutoff, out_noise).forward(x)."""
    orig_shape = x.shape
    orig_dtype = x.dtype
    total = int(x.size)
    if total == 0:
        return x

    rows, cols, needs_pad = _choose_layout(total)
    sub = _sublane_multiple(orig_dtype)
    ebytes = jnp.dtype(orig_dtype).itemsize

    if needs_pad:
        x2d = jnp.pad(x.reshape(-1), (0, rows * cols - total)).reshape(rows, cols)
    else:
        x2d = x.reshape(rows, cols)          # free bitcast (row-major, exact size)

    if rows <= sub:
        tile_rows = rows                      # one block == full array dims
    else:
        max_rows = max(sub, (_TARGET_BLOCK_BYTES // (cols * ebytes)) // sub * sub)
        # >= 2 grid steps when possible so both v7x TensorCores get work.
        tile_rows = min(max_rows, _round_up(pl.cdiv(rows, 2), sub))
    grid = (pl.cdiv(rows, tile_rows),)        # ragged last block is masked by Pallas

    block = pl.BlockSpec((tile_rows, cols), lambda i: (i, 0))
    cparams = pltpu.CompilerParams(dimension_semantics=("parallel",))
    nelems = rows * cols

    if out_noise is None:
        out2d = pl.pallas_call(
            functools.partial(_relu_kernel, cutoff=float(cutoff)),
            out_shape=jax.ShapeDtypeStruct((rows, cols), orig_dtype),
            grid=grid,
            in_specs=[block],
            out_specs=block,
            compiler_params=cparams,
            cost_estimate=pl.CostEstimate(
                flops=nelems, transcendentals=0,
                bytes_accessed=2 * nelems * ebytes),
        )(x2d)
    else:
        if key is None:
            key = jax.random.PRNGKey(0)
        out2d = None
        if hasattr(pltpu, "stateful_normal") and jax.default_backend() == "tpu":
            try:
                seed = jax.random.randint(key, (1,), 0, jnp.iinfo(jnp.int32).max,
                                          dtype=jnp.int32)
                grid_spec = pltpu.PrefetchScalarGridSpec(
                    num_scalar_prefetch=1,
                    grid=grid,
                    in_specs=[pl.BlockSpec((tile_rows, cols), lambda i, s: (i, 0))],
                    out_specs=pl.BlockSpec((tile_rows, cols), lambda i, s: (i, 0)),
                )
                out2d = pl.pallas_call(
                    functools.partial(_relu_noise_hwrng_kernel,
                                      cutoff=float(cutoff),
                                      out_noise=float(out_noise)),
                    out_shape=jax.ShapeDtypeStruct((rows, cols), orig_dtype),
                    grid_spec=grid_spec,
                    compiler_params=cparams,
                    cost_estimate=pl.CostEstimate(
                        flops=3 * nelems, transcendentals=2 * nelems,
                        bytes_accessed=2 * nelems * ebytes),
                )(seed, x2d)
            except Exception:
                out2d = None   # fall back to streamed host-side noise below
        if out2d is None:
            # Fallback (non-TPU backend or older pltpu API): stream f32 noise
            # through the same lane-dense pipeline.
            z2d = jax.random.normal(key, (rows, cols), dtype=jnp.float32)
            out2d = pl.pallas_call(
                functools.partial(_relu_noise_zin_kernel,
                                  cutoff=float(cutoff),
                                  out_noise=float(out_noise)),
                out_shape=jax.ShapeDtypeStruct((rows, cols), orig_dtype),
                grid=grid,
                in_specs=[block, block],
                out_specs=block,
                compiler_params=cparams,
                cost_estimate=pl.CostEstimate(
                    flops=3 * nelems, transcendentals=0,
                    bytes_accessed=(2 * ebytes + 4) * nelems),
            )(x2d, z2d)

    if needs_pad:
        return out2d.reshape(-1)[:total].reshape(orig_shape)
    return out2d.reshape(orig_shape)


if __name__ == "__main__":
    key = jax.random.PRNGKey(0)
    kx, kz = jax.random.split(key)
    # Small NCHW input, consistent with a conv-style feature map.
    x = jax.random.normal(kx, (2, 4, 16, 16), dtype=jnp.float32)

    # 1) Plain ReLU (default module config: cutoff=0.0, out_noise=None).
    y = jax.block_until_ready(relu_forward(x, cutoff=0.0, out_noise=None))
    ref = jnp.maximum(x, 0.0)
    assert y.shape == x.shape and y.dtype == x.dtype
    assert jnp.allclose(y, ref), "ReLU mismatch"

    # 2) Nonzero cutoff.
    y_c = jax.block_until_ready(relu_forward(x, cutoff=0.25))
    assert jnp.allclose(y_c, jnp.maximum(x, 0.25)), "cutoff mismatch"

    # 3) ReLU with output noise: perturbation should look like out_noise*N(0,1).
    noise_level = 0.1
    y_n = jax.block_until_ready(
        relu_forward(x, cutoff=0.0, out_noise=noise_level, key=kz))
    assert y_n.shape == x.shape and y_n.dtype == x.dtype
    delta = (y_n - ref) / noise_level
    mean = float(jnp.mean(delta))
    std = float(jnp.std(delta))
    assert abs(mean) < 0.2, f"unexpected noise mean {mean}"
    assert 0.7 < std < 1.3, f"unexpected noise std {std}"

    print("KERNEL_OK")
</pallas_src>

<mosaic_0001>
module attributes {stable_mosaic.version = 11 : i64} {
  func.func @_relu_kernel(%arg0: i32, %arg1: memref<4x512xf32, #tpu.memory_space<vmem>>, %arg2: memref<4x512xf32, #tpu.memory_space<vmem>>) attributes {dimension_semantics = [#tpu.dimension_semantics<parallel>], iteration_bounds = array<i64: 1>, scalar_prefetch = 0 : i64, scratch_operands = 0 : i64, tpu.core_type = #tpu.core_type<tc>, window_params = [{transform_indices = @transform_0, window_bounds = array<i64: 4, 512>}, {transform_indices = @transform_1, window_bounds = array<i64: 4, 512>}]} {
    %c0 = arith.constant 0 : index
    %c0_0 = arith.constant 0 : index
    %0 = vector.load %arg1[%c0, %c0_0] : memref<4x512xf32, #tpu.memory_space<vmem>>, vector<4x512xf32>
    %cst = arith.constant 0.000000e+00 : f32
    %1 = vector.broadcast %cst : f32 to vector<4x512xf32>
    %2 = arith.maximumf %0, %1 : vector<4x512xf32>
    %c0_1 = arith.constant 0 : index
    %c0_2 = arith.constant 0 : index
    %3 = vector.load %arg2[%c0_1, %c0_2] : memref<4x512xf32, #tpu.memory_space<vmem>>, vector<4x512xf32>
    tpu.vector_store %arg2[%c0_1, %c0_2], %2 {strides = array<i32>} : memref<4x512xf32, #tpu.memory_space<vmem>>, vector<4x512xf32>,
    return
  }
  func.func @transform_0(%arg0: i32) -> (i32, i32) {
    %c0_i32 = arith.constant 0 : i32
    %c0_i32_0 = arith.constant 0 : i32
    return %arg0, %c0_i32 : i32, i32
  }
  func.func @transform_1(%arg0: i32) -> (i32, i32) {
    %c0_i32 = arith.constant 0 : i32
    %c0_i32_0 = arith.constant 0 : i32
    return %arg0, %c0_i32 : i32, i32
  }
}

</mosaic_0001>

<bundles_post_ra>
// kernel: tpu_custom_call.1
= control target key start
LH: loop header
LB: loop body
LE: loop exit
PB: predicated region body
PF: predicated region fallthrough
CT: control target
= control target key end

     0   :  { %6 = vsyncpa [#allocation3], 0  ;;  %s128_s0 = inlined_call_operand.hbm [shape: f32[4,512], index: 0, kind: input, shape index: {}]   ;;  %s129_s1 = inlined_call_operand.hbm [shape: f32[4,512], index: 1, kind: output, shape index: {}]  }
   0x1   :  { %7 = vsyncpa [#allocation4], 0  ;;  %s92_s6 = smov [#allocation2]   ;;  %s44_s10 = scalar_lea.hbm %s128_s0, 256 }
   0x2   :  { %s14_s7 = sshll.u32 %s92_s6, 4  ;;  %p45_p0 = scmp.ne.s32.totalorder %s128_s0, %s44_s10  ;;  %s15_s7 = int_to_ptr.vmem [resolvable:$true] %s14_s7 }
   0x3   :  { %p48_p1 = scmp.lt.u32.totalorder %s44_s10, %s128_s0 }
   0x5   :  { %p50_p2 = pnand %p48_p1, %p45_p0 }
   0x7   :  { %53 = shalt.err (!%p50_p2)
}
   0x8   :  { %s54_s15 = scalar_lea.vmem %s15_s7, 256  ;;  %p59_p4 = scmp.lt.s32.totalorder %s15_s7, %s15_s7 }
   0x9   :  { %p55_p3 = scmp.ne.s32.totalorder %s15_s7, %s54_s15  ;;  %p60_p5 = scmp.lt.s32.totalorder %s54_s15, %s54_s15 }
   0xb   :  { %p61_p6 = por %p60_p5, %p59_p4 }
   0xd   :  { %p62_p7 = pnand %p61_p6, %p55_p3 }
   0xf   :  { %65 = shalt.err (!%p62_p7)
}
  0x10   :  { %17 = dma.hbm_to_vmem [thread:$0]  %s128_s0, 256, %s15_s7, [#allocation3]  }
  0x11   :  { %88 = dma.done.wait [#allocation3], 256  }
  0x12   :  { %89 = vsyncadd [#allocation3], 4294967040  ;;  %s93_s18 = smov [#allocation5]   ;;  %v21_v0 = vld [vmem:[#allocation2] sm:$0xff]  ;;  %v22_v1 = vld [vmem:[#allocation2 + $0x8] sm:$0xff] }
  0x13   :  { %s33_s19 = sshll.u32 %s93_s18, 4  ;;  %v23_v2 = vmax.f32 %v21_v0, 0.0  ;;  %v24_v3 = vmax.f32 %v22_v1, 0.0  ;;  %s34_s19 = int_to_ptr.vmem [resolvable:$true] %s33_s19 }
  0x14   :  { %s66_s20 = scalar_lea.vmem %s34_s19, 256  ;;  %p71_p9 = scmp.lt.s32.totalorder %s34_s19, %s34_s19 }
  0x15   :  { %25 = vst [vmem:[#allocation5] sm:$0xff] %v23_v2  ;;  %26 = vst [vmem:[#allocation5 + $0x8] sm:$0xff] %v24_v3  ;;  %p67_p8 = scmp.ne.s32.totalorder %s34_s19, %s66_s20  ;;  %p72_p10 = scmp.lt.s32.totalorder %s66_s20, %s66_s20 }
  0x17   :  { %p73_p11 = por %p72_p10, %p71_p9 }
  0x19   :  { %p74_p12 = pnand %p73_p11, %p67_p8 }
  0x1b   :  { %77 = shalt.err (!%p74_p12)
}
  0x1c   :  { %s78_s22 = scalar_lea.hbm %s129_s1, 256 }
  0x1d   :  { %p79_p13 = scmp.ne.s32.totalorder %s129_s1, %s78_s22  ;;  %p82_p0 = scmp.lt.u32.totalorder %s78_s22, %s129_s1 }
  0x1f   :  { %p84_p1 = pnand %p82_p0, %p79_p13 }
  0x21   :  { %87 = shalt.err (!%p84_p1)
}
  0x22   :  { %36 = dma.vmem_to_hbm [thread:$0]  %s34_s19, 256, %s129_s1, [#allocation4]  }
  0x23   :  { %90 = dma.done.wait [#allocation4], 256  }
  0x24   :  { %91 = vsyncadd [#allocation4], 4294967040 }
  0x25   :  { %40 = vsyncpa [#allocation3], 1 }
  0x26   :  { %41 = vsyncpa [#allocation4], 1 }

</bundles_post_ra>
